<compile_context>
chip_gen: v6e
topology: v6e:2x2x1
jax: 0.10.0
libtpu: 0.0.40
codegen_flags: <defaults>
</compile_context>

<pallas_src>
import jax
import jax.numpy as jnp
from jax.experimental import pallas as pl
from jax.experimental.pallas import tpu as pltpu


def encoder_rnn_seq_kernel(x_ref, h0_ref, c0_ref,
                           w1_ref, b1_ref, wih_ref, whh_ref, bg_ref,
                           h_out_ref, c_out_ref):
    """Fused T-step forward:
         emb      = relu(x @ W1^T + b1)                (hoisted, all T*B rows at once)
         x_gates  = emb @ Wih^T + (bih + bhh)          (hoisted, g cols pre-scaled x2)
         loop t:  gates = x_gates[t] + h @ Whh^T       (only recurrent work per step)
                  (h, c) = LSTMCell gate math          (1 sigmoid + 1 tanh per step)
    """
    B, H = h0_ref.shape
    T = x_ref.shape[0] // B

    # ---- hoisted, non-recurrent compute: two MXU passes over all T*B rows ----
    emb = jnp.dot(x_ref[...], w1_ref[...],
                  preferred_element_type=jnp.float32) + b1_ref[...]       # (T*B, E)
    emb = jnp.maximum(emb, 0.0)
    x_gates = (jnp.dot(emb, wih_ref[...],
                       preferred_element_type=jnp.float32)
               + bg_ref[...])                                             # (T*B, 4H)

    whh_t = whh_ref[...]                                                  # (H, 4H)

    # ---- serial recurrence, fully unrolled (static T); h/c live in vregs ----
    h = h0_ref[...]
    c = c0_ref[...]
    for t in range(T):   # straight-line code; each slice is a clean 8-row sublane tile
        gates = x_gates[t * B:(t + 1) * B, :] + jnp.dot(
            h, whh_t, preferred_element_type=jnp.float32)                 # (B, 4H)

        # Single full-width sigmoid covers every gate (g columns were pre-scaled
        # by 2 at prep time, so tanh(z) = 2*sigmoid(2z) - 1 is one VALU fma).
        s = jax.nn.sigmoid(gates)
        i_g = s[:, 0 * H:1 * H]
        f_g = s[:, 1 * H:2 * H]
        g_g = 2.0 * s[:, 2 * H:3 * H] - 1.0
        o_g = s[:, 3 * H:4 * H]

        c = f_g * c + i_g * g_g
        h = o_g * jnp.tanh(c)

    h_out_ref[...] = h
    c_out_ref[...] = c


def prepare_encoder_params(params):
    """One-time parameter preparation (transposes, bias pre-add, g-gate pre-scale)."""
    w1 = jnp.asarray(params["w1"], jnp.float32)
    b1 = jnp.asarray(params["b1"], jnp.float32)
    wih = jnp.asarray(params["wih"], jnp.float32)
    whh = jnp.asarray(params["whh"], jnp.float32)
    bih = jnp.asarray(params["bih"], jnp.float32)
    bhh = jnp.asarray(params["bhh"], jnp.float32)
    H = whh.shape[-1]
    # Scale the g (cell-input) gate columns by 2 so tanh(z) = 2*sigmoid(2z) - 1
    # lets a single sigmoid over (B, 4H) serve all four gates.  x2 is exact in fp.
    gate_scale = jnp.concatenate(
        [jnp.ones((2 * H,), jnp.float32),
         jnp.full((H,), 2.0, jnp.float32),
         jnp.ones((H,), jnp.float32)])
    return {
        "w1_t":    w1.T,                                   # (In, E)
        "b1":      b1[None, :],                            # (1, E)
        "wih_t":   wih.T * gate_scale[None, :],            # (E, 4H), g cols x2
        "whh_t":   whh.T * gate_scale[None, :],            # (H, 4H), g cols x2
        "b_gates": ((bih + bhh) * gate_scale)[None, :],    # (1, 4H), g cols x2
    }


def encoder_rnn_sequence_forward(x_seq, hidden, prepared):
    """Fused path: run all T steps in a single pallas_call; returns final (h, c)."""
    h0, c0 = hidden
    B, H = h0.shape
    T, _, In = x_seq.shape
    x2d = x_seq.reshape(T * B, In)   # one dense row block for the hoisted matmuls

    vmem = pl.BlockSpec(memory_space=pltpu.MemorySpace.VMEM)
    out_shapes = (jax.ShapeDtypeStruct((B, H), jnp.float32),
                  jax.ShapeDtypeStruct((B, H), jnp.float32))

    return pl.pallas_call(
        encoder_rnn_seq_kernel,
        out_shape=out_shapes,
        in_specs=[vmem] * 8,
        out_specs=(vmem, vmem),
    )(x2d, h0, c0,
      prepared["w1_t"], prepared["b1"],
      prepared["wih_t"], prepared["whh_t"], prepared["b_gates"])


def encoder_rnn_forward(x, hidden, prepared):
    """Single-step EncoderRNN.forward(x, hidden) -> (h', c') (module semantics)."""
    return encoder_rnn_sequence_forward(x[None], hidden, prepared)


def _reference_forward(x, hidden, params):
    """Pure-JAX reference with PyTorch LSTMCell semantics (gate order i, f, g, o)."""
    h, c = hidden
    emb = jax.nn.relu(x @ params["w1"].T + params["b1"])
    gates = emb @ params["wih"].T + params["bih"] + h @ params["whh"].T + params["bhh"]
    H = h.shape[-1]
    i_g = jax.nn.sigmoid(gates[:, 0 * H:1 * H])
    f_g = jax.nn.sigmoid(gates[:, 1 * H:2 * H])
    g_g = jnp.tanh(gates[:, 2 * H:3 * H])
    o_g = jax.nn.sigmoid(gates[:, 3 * H:4 * H])
    c_new = f_g * c + i_g * g_g
    h_new = o_g * jnp.tanh(c_new)
    return h_new, c_new


if __name__ == "__main__":
    # Module hyperparameters (defaults of EncoderRNN).
    input_size, embedding_size, hidden_size = 2, 8, 16
    batch, seq_len = 8, 6

    key = jax.random.PRNGKey(0)
    keys = jax.random.split(key, 10)

    def unif(k, shape, fan_in):
        bound = 1.0 / jnp.sqrt(jnp.float32(fan_in))
        return jax.random.uniform(k, shape, jnp.float32, -bound, bound)

    params = {
        "w1":  unif(keys[0], (embedding_size, input_size), input_size),
        "b1":  unif(keys[1], (embedding_size,), input_size),
        "wih": unif(keys[2], (4 * hidden_size, embedding_size), hidden_size),
        "whh": unif(keys[3], (4 * hidden_size, hidden_size), hidden_size),
        "bih": unif(keys[4], (4 * hidden_size,), hidden_size),
        "bhh": unif(keys[5], (4 * hidden_size,), hidden_size),
    }
    prepared = prepare_encoder_params(params)   # one-time prep (hoisted)

    x = jax.random.normal(keys[6], (batch, input_size), jnp.float32)
    h0 = jax.random.normal(keys[7], (batch, hidden_size), jnp.float32)
    c0 = jax.random.normal(keys[8], (batch, hidden_size), jnp.float32)
    x_seq = jax.random.normal(keys[9], (seq_len, batch, input_size), jnp.float32)

    # --- single step (exact module semantics) ---
    h1, c1 = encoder_rnn_forward(x, (h0, c0), prepared)
    jax.block_until_ready((h1, c1))
    h_r, c_r = _reference_forward(x, (h0, c0), params)
    assert jnp.allclose(h1, h_r, atol=1e-5), "single-step h mismatch vs reference"
    assert jnp.allclose(c1, c_r, atol=1e-5), "single-step c mismatch vs reference"

    # --- fused multi-step sequence (single pallas_call, state in vregs) ---
    hT, cT = encoder_rnn_sequence_forward(x_seq, (h0, c0), prepared)
    jax.block_until_ready((hT, cT))
    h_ref, c_ref = h0, c0
    for t in range(seq_len):
        h_ref, c_ref = _reference_forward(x_seq[t], (h_ref, c_ref), params)
    assert jnp.allclose(hT, h_ref, atol=1e-5), "sequence h mismatch vs reference"
    assert jnp.allclose(cT, c_ref, atol=1e-5), "sequence c mismatch vs reference"

    print("KERNEL_OK")
</pallas_src>

<mosaic_0001>
module attributes {stable_mosaic.version = 11 : i64} {
  func.func @encoder_rnn_seq_kernel(%arg0: memref<8x2xf32, #tpu.memory_space<vmem>>, %arg1: memref<8x16xf32, #tpu.memory_space<vmem>>, %arg2: memref<8x16xf32, #tpu.memory_space<vmem>>, %arg3: memref<2x8xf32, #tpu.memory_space<vmem>>, %arg4: memref<1x8xf32, #tpu.memory_space<vmem>>, %arg5: memref<8x64xf32, #tpu.memory_space<vmem>>, %arg6: memref<16x64xf32, #tpu.memory_space<vmem>>, %arg7: memref<1x64xf32, #tpu.memory_space<vmem>>, %arg8: memref<8x16xf32, #tpu.memory_space<vmem>>, %arg9: memref<8x16xf32, #tpu.memory_space<vmem>>) attributes {dimension_semantics = [], scalar_prefetch = 0 : i64, scratch_operands = 0 : i64, tpu.core_type = #tpu.core_type<tc>} {
    %c0 = arith.constant 0 : index
    %c0_0 = arith.constant 0 : index
    %0 = vector.load %arg0[%c0, %c0_0] : memref<8x2xf32, #tpu.memory_space<vmem>>, vector<8x2xf32>
    %c0_1 = arith.constant 0 : index
    %c0_2 = arith.constant 0 : index
    %1 = vector.load %arg3[%c0_1, %c0_2] : memref<2x8xf32, #tpu.memory_space<vmem>>, vector<2x8xf32>
    %cst = arith.constant dense<0.000000e+00> : vector<8x8xf32>
    %2 = tpu.matmul %0, %1, %cst {dimension_numbers = #tpu.dot_dimension_numbers<[1], [0], [0], [1], [0, 0, 1, 1], [], []>} : vector<8x2xf32>, vector<2x8xf32>, vector<8x8xf32> -> vector<8x8xf32>
    %c0_3 = arith.constant 0 : index
    %c0_4 = arith.constant 0 : index
    %3 = vector.load %arg4[%c0_3, %c0_4] : memref<1x8xf32, #tpu.memory_space<vmem>>, vector<1x8xf32>
    %4 = vector.broadcast %3 : vector<1x8xf32> to vector<8x8xf32>
    %5 = arith.addf %2, %4 : vector<8x8xf32>
    %cst_5 = arith.constant 0.000000e+00 : f32
    %6 = vector.broadcast %cst_5 : f32 to vector<8x8xf32>
    %7 = arith.maximumf %5, %6 : vector<8x8xf32>
    %c0_6 = arith.constant 0 : index
    %c0_7 = arith.constant 0 : index
    %8 = vector.load %arg5[%c0_6, %c0_7] : memref<8x64xf32, #tpu.memory_space<vmem>>, vector<8x64xf32>
    %cst_8 = arith.constant dense<0.000000e+00> : vector<8x64xf32>
    %9 = tpu.matmul %7, %8, %cst_8 {dimension_numbers = #tpu.dot_dimension_numbers<[1], [0], [0], [1], [0, 0, 1, 1], [], []>} : vector<8x8xf32>, vector<8x64xf32>, vector<8x64xf32> -> vector<8x64xf32>
    %c0_9 = arith.constant 0 : index
    %c0_10 = arith.constant 0 : index
    %10 = vector.load %arg7[%c0_9, %c0_10] : memref<1x64xf32, #tpu.memory_space<vmem>>, vector<1x64xf32>
    %11 = vector.broadcast %10 : vector<1x64xf32> to vector<8x64xf32>
    %12 = arith.addf %9, %11 : vector<8x64xf32>
    %c0_11 = arith.constant 0 : index
    %c0_12 = arith.constant 0 : index
    %13 = vector.load %arg6[%c0_11, %c0_12] : memref<16x64xf32, #tpu.memory_space<vmem>>, vector<16x64xf32>
    %c0_13 = arith.constant 0 : index
    %c0_14 = arith.constant 0 : index
    %14 = vector.load %arg1[%c0_13, %c0_14] : memref<8x16xf32, #tpu.memory_space<vmem>>, vector<8x16xf32>
    %c0_15 = arith.constant 0 : index
    %c0_16 = arith.constant 0 : index
    %15 = vector.load %arg2[%c0_15, %c0_16] : memref<8x16xf32, #tpu.memory_space<vmem>>, vector<8x16xf32>
    %cst_17 = arith.constant dense<0.000000e+00> : vector<8x64xf32>
    %16 = tpu.matmul %14, %13, %cst_17 {dimension_numbers = #tpu.dot_dimension_numbers<[1], [0], [0], [1], [0, 0, 1, 1], [], []>} : vector<8x16xf32>, vector<16x64xf32>, vector<8x64xf32> -> vector<8x64xf32>
    %17 = arith.addf %12, %16 : vector<8x64xf32>
    %18 = arith.negf %17 : vector<8x64xf32>
    %19 = math.exp %18 : vector<8x64xf32>
    %cst_18 = arith.constant 1.000000e+00 : f32
    %20 = vector.broadcast %cst_18 : f32 to vector<8x64xf32>
    %21 = arith.addf %20, %19 : vector<8x64xf32>
    %22 = arith.divf %20, %21 : vector<8x64xf32>
    %23 = vector.extract_strided_slice %22 {offsets = [0, 0], sizes = [8, 16], strides = [1, 1]} : vector<8x64xf32> to vector<8x16xf32>
    %24 = vector.extract_strided_slice %22 {offsets = [0, 16], sizes = [8, 16], strides = [1, 1]} : vector<8x64xf32> to vector<8x16xf32>
    %25 = vector.extract_strided_slice %22 {offsets = [0, 32], sizes = [8, 16], strides = [1, 1]} : vector<8x64xf32> to vector<8x16xf32>
    %cst_19 = arith.constant 2.000000e+00 : f32
    %26 = vector.broadcast %cst_19 : f32 to vector<8x16xf32>
    %27 = arith.mulf %26, %25 : vector<8x16xf32>
    %cst_20 = arith.constant 1.000000e+00 : f32
    %28 = vector.broadcast %cst_20 : f32 to vector<8x16xf32>
    %29 = arith.subf %27, %28 : vector<8x16xf32>
    %30 = vector.extract_strided_slice %22 {offsets = [0, 48], sizes = [8, 16], strides = [1, 1]} : vector<8x64xf32> to vector<8x16xf32>
    %31 = arith.mulf %24, %15 : vector<8x16xf32>
    %32 = arith.mulf %23, %29 : vector<8x16xf32>
    %33 = arith.addf %31, %32 : vector<8x16xf32>
    %34 = math.tanh %33 : vector<8x16xf32>
    %35 = arith.mulf %30, %34 : vector<8x16xf32>
    %c0_21 = arith.constant 0 : index
    %c0_22 = arith.constant 0 : index
    %36 = vector.load %arg8[%c0_21, %c0_22] : memref<8x16xf32, #tpu.memory_space<vmem>>, vector<8x16xf32>
    tpu.vector_store %arg8[%c0_21, %c0_22], %35 {strides = array<i32>} : memref<8x16xf32, #tpu.memory_space<vmem>>, vector<8x16xf32>,
    %c0_23 = arith.constant 0 : index
    %c0_24 = arith.constant 0 : index
    %37 = vector.load %arg9[%c0_23, %c0_24] : memref<8x16xf32, #tpu.memory_space<vmem>>, vector<8x16xf32>
    tpu.vector_store %arg9[%c0_23, %c0_24], %33 {strides = array<i32>} : memref<8x16xf32, #tpu.memory_space<vmem>>, vector<8x16xf32>,
    return
  }
}

</mosaic_0001>

<bundles_post_ra>
// kernel: tpu_custom_call.1
= control target key start
LH: loop header
LB: loop body
LE: loop exit
PB: predicated region body
PF: predicated region fallthrough
CT: control target
= control target key end

     0   :  { %15 = vsyncpa [#allocation3], 0  ;;  %s642_s0 = inlined_call_operand.vmem [shape: f32[8,2], index: 0, kind: input, shape index: {}]   ;;  %s643_s1 = inlined_call_operand.hbm [shape: f32[8,16], index: 1, kind: input, shape index: {}]   ;;  %s644_s2 = inlined_call_operand.hbm [shape: f32[8,16], index: 2, kind: input, shape index: {}]   ;;  %s645_s3 = inlined_call_operand.vmem [shape: f32[2,8], index: 3, kind: input, shape index: {}]   ;;  %s646_s4 = inlined_call_operand.vmem [shape: f32[1,8], index: 4, kind: input, shape index: {}]   ;;  %s647_s5 = inlined_call_operand.hbm [shape: f32[8,64], index: 5, kind: input, shape index: {}]   ;;  %s648_s6 = inlined_call_operand.vmem [shape: f32[16,64], index: 6, kind: input, shape index: {}]   ;;  %s649_s7 = inlined_call_operand.vmem [shape: f32[1,64], index: 7, kind: input, shape index: {}]   ;;  %s650_s8 = inlined_call_operand.hbm [shape: f32[8,16], index: 8, kind: output, shape index: {0}]   ;;  %s651_s9 = inlined_call_operand.hbm [shape: f32[8,16], index: 9, kind: output, shape index: {1}]  }
   0x1   :  { %16 = vsyncpa [#allocation6], 0 }
   0x2   :  { %17 = vsyncpa [#allocation4], 0 }
   0x3   :  { %18 = vsyncpa [#allocation10], 0  ;;  %s544_s30 = smov [#allocation5]   ;;  %s545_s11 = smov [#allocation2]  }
   0x4   :  { %s37_s10 = sshll.u32 %s544_s30, 4  ;;  %s27_s12 = sshll.u32 %s545_s11, 4  ;;  %s38_s10 = int_to_ptr.vmem [resolvable:$true] %s37_s10  ;;  %s28_s12 = int_to_ptr.vmem [resolvable:$true] %s27_s12 }
   0x5   :  { %s444_s13 = scalar_lea.vmem %s38_s10, 128  ;;  %p449_p1 = scmp.lt.s32.totalorder %s38_s10, %s38_s10 }
   0x6   :  { %p445_p0 = scmp.ne.s32.totalorder %s38_s10, %s444_s13  ;;  %p450_p2 = scmp.lt.s32.totalorder %s444_s13, %s444_s13 }
   0x8   :  { %p451_p3 = por %p450_p2, %p449_p1 }
   0xa   :  { %p452_p4 = pnand %p451_p3, %p445_p0 }
   0xc   :  { %455 = shalt.err (!%p452_p4)
}
   0xd   :  { %40 = dma.hbm_to_vmem [thread:$0]  %s644_s2, 128, %s38_s10, [#allocation6]  }
   0xe   :  { %s464_s16 = scalar_lea.vmem %s28_s12, 128  ;;  %p469_p6 = scmp.lt.s32.totalorder %s28_s12, %s28_s12 }
   0xf   :  { %p465_p5 = scmp.ne.s32.totalorder %s28_s12, %s464_s16  ;;  %p470_p7 = scmp.lt.s32.totalorder %s464_s16, %s464_s16 }
  0x11   :  { %p471_p8 = por %p470_p7, %p469_p6 }
  0x13   :  { %p472_p9 = pnand %p471_p8, %p465_p5 }
  0x15   :  { %475 = shalt.err (!%p472_p9)
}
  0x16   :  { %30 = dma.hbm_to_vmem [thread:$0]  %s643_s1, 128, %s28_s12, [#allocation3]  }
  0x17   :  { %s546_s19 = smov [#allocation7]  }
  0x18   :  { %s51_s20 = sshll.u32 %s546_s19, 4  ;;  %s52_s20 = int_to_ptr.vmem [resolvable:$true] %s51_s20 }
  0x19   :  { %s484_s21 = scalar_lea.vmem %s52_s20, 128  ;;  %p489_p11 = scmp.lt.s32.totalorder %s52_s20, %s52_s20 }
  0x1a   :  { %p485_p10 = scmp.ne.s32.totalorder %s52_s20, %s484_s21  ;;  %p490_p12 = scmp.lt.s32.totalorder %s484_s21, %s484_s21 }
  0x1c   :  { %p491_p13 = por %p490_p12, %p489_p11 }
  0x1e   :  { %p492_p0 = pnand %p491_p13, %p485_p10 }
  0x20   :  { %495 = shalt.err (!%p492_p0)
}
  0x21   :  { %54 = dma.hbm_to_vmem [thread:$0]  %s647_s5, 128, %s52_s20, [#allocation6]  }
  0x22   :  { %536 = dma.done.wait [#allocation3], 128  }
  0x23   :  { %537 = vsyncadd [#allocation3], 4294967168 }
  0x24   :  { %538 = dma.done.wait [#allocation6], 256  }
  0x25   :  { %539 = vsyncadd [#allocation6], 4294967040  ;;  %v547_v0 = vmov 0.0   ;;  %vm548_vm0 = vmmov 0   ;;  %vm81_vm1 = vcmask 1041408   ;;  %vm77_vm2 = vcmask 15360  }
  0x26   :  { %401 = vmatprep.subr.mxu0 %v547_v0  ;;  %403 = vmatprep.mubr.msk.f32.mxu0 %vm548_vm0, %v547_v0  ;;  %v69_v1 = vld [vmem:[%s645_s3] sm:$0x3]  ;;  %v239_v3 = vld [vmem:[%s648_s6 + $0x8] sm:$0xff]  ;;  %v156_v4 = vld [vmem:[#allocation7] sm:$0xff]  ;;  %vm242_vm3 = vcmask 130048   ;;  %vm164_vm4 = vcmask 64512  }
  0x27   :  { %406 = vmatprep.subr.mxu1 %v547_v0  ;;  %408 = vmatprep.mubr.msk.f32.mxu1 %vm548_vm0, %v547_v0  ;;  %v68_v2 = vld [vmem:[%s642_s0] sm:$0xff]  ;;  %v241_v25 = vld [vmem:[#allocation5] sm:$0xff]  ;;  %s550_s30 = smov 16   ;;  %s552_s10 = smov 112  }
  0x28   :  { %402 = vmatpush3.msk.msra.mxu0 %vm81_vm1, %v69_v1  ;;  %v238_v5 = vld [vmem:[%s648_s6] sm:$0xff]  ;;  %407 = vmatpush3.msra.mxu1 %v156_v4  ;;  %s553_s11 = smov [#allocation9]   ;;  %s554_s13 = smov 80  }
  0x29   :  { %404 = vmatmul.mubr.msk.f32.vlgmr.msra.gmra.mxu0 %vm77_vm2, %v68_v2  ;;  %411 = vmatprep.subr.mxu0 %v547_v0  ;;  %v240_v6 = vld [vmem:[#allocation2] sm:$0xff]  ;;  %s372_s12 = sshll.u32 %s553_s11, 4  ;;  %s373_s12 = int_to_ptr.vmem [resolvable:$true] %s372_s12 }
  0x2a   :  { %415 = vmatprep.mubr.msk.f32.mxu0 %vm548_vm0, %v547_v0  ;;  %412 = vmatpush3.msra.mxu0 %v239_v3  ;;  %v386_v7 = vld [vmem:[%s646_s4] ss:$0 sm:$0xff]  ;;  %s549_s4 = smov 96   ;;  %s496_s14 = scalar_lea.vmem %s373_s12, 128 }
  0x2b   :  { %413 = vmatprep.subr.mxu0 %v547_v0  ;;  %v389_v14 = vld [vmem:[%s649_s7] ss:$0 sm:$0xff]  ;;  %s551_s7 = smov 32   ;;  %p497_p1 = scmp.ne.s32.totalorder %s373_s12, %s496_s14 }
  0x2c   :  { %414 = vmatpush3.msra.mxu0 %v238_v5  ;;  %p501_p2 = scmp.lt.s32.totalorder %s373_s12, %s373_s12  ;;  %p502_p3 = scmp.lt.s32.totalorder %s496_s14, %s496_s14 }
  0x2d   :  { %416 = vmatmul.mubr.msk.f32.vlgmr.msra.gmra.mxu0 %vm242_vm3, %v240_v6 }
  0x2e   :  { %p503_p4 = por %p502_p3, %p501_p2 }
  0x30   :  { %p504_p5 = pnand %p503_p4, %p497_p1 }
  0xe9   :  { %v151_v8 = vpop.f32.mrf.mxu0 }
  0xea   :  { %v152_v9 = vadd.f32 %v386_v7, %v151_v8 }
  0xeb   :  { %v405_v10 = vpop.f32.mrf.mxu0 }
  0xec   :  { %v155_v11 = vmax.f32 %v152_v9, 0.0 }
  0xed   :  { %v312_v12 = vpop.f32.mrf.mxu0 }
  0xee   :  { %409 = vmatmul.mubr.msk.f32.vlgmr.msra.gmra.mxu1 %vm164_vm4, %v155_v11 }
  0xef   :  { %v417_v13 = vpop.f32.mrf.mxu0 }
 0x1ae   :  { %v234_v15 = vpop.f32.mrf.mxu1 }
 0x1af   :  { %v235_v16 = vadd.f32 %v389_v14, %v234_v15 }
 0x1b0   :  { %v410_v17 = vpop.f32.mrf.mxu1 }
 0x1b1   :  { %v316_v18 = vadd.f32 %v312_v12, %v235_v16 }
 0x1b3   :  { %v392_v19 = vmul.f32 -1.442695, %v316_v18 }
 0x1b5   :  { %430 = vpow2.f32 %v392_v19 }
 0x1c2   :  { %v431_v20 = vpop.eup %430 }
 0x1c3   :  { %v320_v21 = vadd.f32 1.0, %v431_v20 }
 0x1c5   :  { %432 = vrcp.f32 %v320_v21 }
 0x1d2   :  { %v433_v22 = vpop.eup %432 }
 0x1d3   :  { %v323_v23 = vmul.f32 2.0, %v433_v22 }
 0x1d5   :  { %v393_v24 = vadd.f32 -1.0, %v323_v23 }
 0x1d7   :  { %331 = vrot.lane.b32.xlu0 %v393_v24, %s549_s4 }
 0x1db   :  { %326 = vrot.lane.b32.xlu0 %v241_v25, %s550_s30 }
 0x249   :  { %v332_v26 = vpop.permute.xlu0 %331 }
 0x24a   :  { %v334_v27 = vmul.f32 %v433_v22, %v332_v26 }
 0x24c   :  { %336 = vrot.lane.b32.xlu1 %v334_v27, %s550_s30 }
 0x24d   :  { %v327_v28 = vpop.permute.xlu0 %326 }
 0x24e   :  { %v329_v29 = vmul.f32 %v433_v22, %v327_v28 }
 0x2be   :  { %v337_v30 = vpop.permute.xlu1 %336 }
 0x2bf   :  { %v339_v31 = vadd.f32 %v337_v30, %v329_v29 }
 0x2c1   :  { %434 = vtanh.f32 %v339_v31 }
 0x2ce   :  { %v435_v32 = vpop.eup %434 }
 0x2cf   :  { %342 = vrot.lane.b32.xlu1 %v435_v32, %s551_s7 }
 0x2d3   :  { %352 = vrot.lane.b32.xlu1 %v339_v31, %s552_s10 }
 0x341   :  { %v343_v33 = vpop.permute.xlu1 %342 }
 0x342   :  { %v345_v34 = vmul.f32 %v433_v22, %v343_v33 }
 0x344   :  { %347 = vrot.lane.b32.xlu0 %v345_v34, %s554_s13 }
 0x345   :  { %v353_v35 = vpop.permute.xlu1 %352 }
 0x346   :  { %355 = vst.msk [vmem:[#allocation9] sm:$0xff] %vm242_vm3, %v353_v35 }
 0x347   :  { %507 = shalt.err (!%p504_p5)
}
 0x348   :  { %375 = dma.vmem_to_hbm [thread:$0]  %s373_s12, 128, %s651_s9, [#allocation10]  }
 0x349   :  { %s555_s17 = smov [#allocation8]  }
 0x34a   :  { %s362_s18 = sshll.u32 %s555_s17, 4  ;;  %s363_s18 = int_to_ptr.vmem [resolvable:$true] %s362_s18 }
 0x34b   :  { %s516_s19 = scalar_lea.vmem %s363_s18, 128  ;;  %p521_p7 = scmp.lt.s32.totalorder %s363_s18, %s363_s18 }
 0x34c   :  { %p517_p6 = scmp.ne.s32.totalorder %s363_s18, %s516_s19  ;;  %p522_p8 = scmp.lt.s32.totalorder %s516_s19, %s516_s19 }
 0x34e   :  { %p523_p9 = por %p522_p8, %p521_p7 }
 0x350   :  { %p524_p10 = pnand %p523_p9, %p517_p6 }
 0x3b6   :  { %v348_v36 = vpop.permute.xlu0 %347 }
 0x3b7   :  { %350 = vst.msk [vmem:[#allocation8] sm:$0xff] %vm242_vm3, %v348_v36 }
 0x3b8   :  { %527 = shalt.err (!%p524_p10)
}
 0x3b9   :  { %365 = dma.vmem_to_hbm [thread:$0]  %s363_s18, 128, %s650_s8, [#allocation4]  }
 0x3ba   :  { %540 = dma.done.wait [#allocation4], 128  }
 0x3bb   :  { %541 = vsyncadd [#allocation4], 4294967168 }
 0x3bc   :  { %542 = dma.done.wait [#allocation10], 128  }
 0x3bd   :  { %543 = vsyncadd [#allocation10], 4294967168 }
 0x3be   :  { %382 = vsyncpa [#allocation3], 1 }
 0x3bf   :  { %383 = vsyncpa [#allocation6], 1 }
 0x3c0   :  { %384 = vsyncpa [#allocation4], 1 }
 0x3c1   :  { %385 = vsyncpa [#allocation10], 1 }

</bundles_post_ra>
